<compile_context>
chip_gen: v6e
topology: v6e:2x2x1
jax: 0.10.0
libtpu: 0.0.40
codegen_flags: <defaults>
</compile_context>

<pallas_src>
import jax
import jax.numpy as jnp
from jax.experimental import pallas as pl
from jax.experimental.pallas import tpu as pltpu


def _mlp_kernel(x_ref, w1_ref, b1_ref, w2_ref, b2_ref,
                w3_ref, b3_ref, w4_ref, b4_ref, o_ref):
    # One (TM, n_feature) tile of rows per grid step; weights are VMEM-resident.
    x = x_ref[...]                                             # bf16 (or f32)

    h = jnp.dot(x, w1_ref[...], preferred_element_type=jnp.float32) + b1_ref[...]
    h = jnp.tanh(h).astype(w2_ref.dtype)                       # tanh on EUP in f32

    h = jnp.dot(h, w2_ref[...], preferred_element_type=jnp.float32) + b2_ref[...]
    h = jnp.tanh(h).astype(w3_ref.dtype)

    h = jnp.dot(h, w3_ref[...], preferred_element_type=jnp.float32) + b3_ref[...]
    h = jnp.tanh(h).astype(w4_ref.dtype)

    out = jnp.dot(h, w4_ref[...], preferred_element_type=jnp.float32) + b4_ref[...]
    o_ref[...] = out.astype(o_ref.dtype)                       # lane-dense store


def net_forward(x, params, *, tm=512, use_bf16=True):
    """Fused MLP forward pass as a batch-tiled Pallas TPU kernel.

    x: (batch, n_feature) float32
    params: dict with w1..w4 of shape (in, out) and b1..b4 of shape (1, out).
    tm: batch tile size (multiple of 8, clamped to the 8-rounded batch).
    """
    batch, n_feature = x.shape
    n_output = params["w4"].shape[1]

    # Batch tile: multiple of 8, no larger than the (8-rounded) batch.
    tm = int(max(8, min(tm, pl.cdiv(batch, 8) * 8)))
    padded_b = int(pl.cdiv(batch, tm)) * tm
    if padded_b != batch:
        x = jnp.pad(x, ((0, padded_b - batch), (0, 0)))

    # Lane-dense output: pad the last layer's output columns to a multiple of 128.
    n_out_pad = int(pl.cdiv(max(n_output, 1), 128)) * 128

    mxu_dtype = jnp.bfloat16 if use_bf16 else jnp.float32
    x_c = x.astype(mxu_dtype)
    w1 = params["w1"].astype(mxu_dtype)
    w2 = params["w2"].astype(mxu_dtype)
    w3 = params["w3"].astype(mxu_dtype)
    w4 = params["w4"].astype(mxu_dtype)
    b1 = params["b1"].astype(jnp.float32)
    b2 = params["b2"].astype(jnp.float32)
    b3 = params["b3"].astype(jnp.float32)
    b4 = params["b4"].astype(jnp.float32)
    if n_out_pad != n_output:
        w4 = jnp.pad(w4, ((0, 0), (0, n_out_pad - n_output)))
        b4 = jnp.pad(b4, ((0, 0), (0, n_out_pad - n_output)))

    args = (x_c, w1, b1, w2, b2, w3, b3, w4, b4)

    def resident(a):
        # Full-array block, same block index every grid step -> fetched once,
        # stays resident in VMEM.
        zeros = (0,) * a.ndim
        return pl.BlockSpec(a.shape, lambda i: zeros)

    in_specs = [pl.BlockSpec((tm, n_feature), lambda i: (i, 0))]
    in_specs += [resident(a) for a in args[1:]]
    out_specs = pl.BlockSpec((tm, n_out_pad), lambda i: (i, 0))

    # Advisory cost estimate for the XLA scheduler.
    flops = 2 * padded_b * (n_feature * 256 + 256 * 128 + 128 * 64 + 64 * n_out_pad)
    transcendentals = padded_b * (256 + 128 + 64)
    bytes_accessed = (sum(int(a.size) * a.dtype.itemsize for a in args)
                      + padded_b * n_out_pad * 4)

    out = pl.pallas_call(
        _mlp_kernel,
        out_shape=jax.ShapeDtypeStruct((padded_b, n_out_pad), jnp.float32),
        grid=(padded_b // tm,),
        in_specs=in_specs,
        out_specs=out_specs,
        compiler_params=pltpu.CompilerParams(
            dimension_semantics=("parallel",)),
        cost_estimate=pl.CostEstimate(
            flops=flops,
            transcendentals=transcendentals,
            bytes_accessed=bytes_accessed),
    )(*args)

    return out[:batch, :n_output]


def init_params(key, n_feature, n_output):
    """Deterministic init mimicking PyTorch Linear default U(-1/sqrt(fan_in), +)."""
    dims = [(n_feature, 256), (256, 128), (128, 64), (64, n_output)]
    params = {}
    for i, (fan_in, fan_out) in enumerate(dims, start=1):
        key, kw, kb = jax.random.split(key, 3)
        bound = 1.0 / (fan_in ** 0.5)
        params[f"w{i}"] = jax.random.uniform(
            kw, (fan_in, fan_out), jnp.float32, -bound, bound)
        params[f"b{i}"] = jax.random.uniform(
            kb, (1, fan_out), jnp.float32, -bound, bound)
    return params


def reference_forward(x, params, compute_dtype=jnp.float32):
    """Pure-JAX reference mirroring the kernel's dtype path."""
    def layer(h, w, b):
        return jnp.dot(h.astype(compute_dtype), w.astype(compute_dtype),
                       preferred_element_type=jnp.float32) + b
    h = jnp.tanh(layer(x, params["w1"], params["b1"]))
    h = jnp.tanh(layer(h, params["w2"], params["b2"]))
    h = jnp.tanh(layer(h, params["w3"], params["b3"]))
    return layer(h, params["w4"], params["b4"])


if __name__ == "__main__":
    key = jax.random.PRNGKey(0)
    n_feature, n_output = 32, 10
    params = init_params(key, n_feature, n_output)

    # Case 1: small batch (single grid step).
    key, kx = jax.random.split(key)
    x = jax.random.normal(kx, (8, n_feature), jnp.float32)
    out = jax.block_until_ready(net_forward(x, params))
    ref = reference_forward(x, params, compute_dtype=jnp.bfloat16)
    assert out.shape == (8, n_output)
    assert jnp.allclose(out, ref, atol=5e-3, rtol=5e-3), "mismatch vs reference (batch=8)"

    # Case 2: non-multiple batch with >1 grid step (exercises padding/tiling).
    key, kx = jax.random.split(key)
    x2 = jax.random.normal(kx, (40, n_feature), jnp.float32)
    out2 = jax.block_until_ready(net_forward(x2, params, tm=16))
    ref2 = reference_forward(x2, params, compute_dtype=jnp.bfloat16)
    assert out2.shape == (40, n_output)
    assert jnp.allclose(out2, ref2, atol=5e-3, rtol=5e-3), "mismatch vs reference (batch=40)"

    print("KERNEL_OK")
</pallas_src>

<mosaic_0001>
module attributes {stable_mosaic.version = 11 : i64} {
  func.func @_mlp_kernel(%arg0: i32, %arg1: memref<8x32xbf16, #tpu.memory_space<vmem>>, %arg2: memref<32x256xbf16, #tpu.memory_space<vmem>>, %arg3: memref<1x256xf32, #tpu.memory_space<vmem>>, %arg4: memref<256x128xbf16, #tpu.memory_space<vmem>>, %arg5: memref<1x128xf32, #tpu.memory_space<vmem>>, %arg6: memref<128x64xbf16, #tpu.memory_space<vmem>>, %arg7: memref<1x64xf32, #tpu.memory_space<vmem>>, %arg8: memref<64x128xbf16, #tpu.memory_space<vmem>>, %arg9: memref<1x128xf32, #tpu.memory_space<vmem>>, %arg10: memref<8x128xf32, #tpu.memory_space<vmem>>) attributes {dimension_semantics = [#tpu.dimension_semantics<parallel>], iteration_bounds = array<i64: 1>, scalar_prefetch = 0 : i64, scratch_operands = 0 : i64, tpu.core_type = #tpu.core_type<tc>, window_params = [{transform_indices = @transform_0, window_bounds = array<i64: 8, 32>}, {pipeline_mode = #tpu.pipeline_mode<synchronous>, transform_indices = @transform_1, window_bounds = array<i64: 32, 256>}, {pipeline_mode = #tpu.pipeline_mode<synchronous>, transform_indices = @transform_2, window_bounds = array<i64: 1, 256>}, {pipeline_mode = #tpu.pipeline_mode<synchronous>, transform_indices = @transform_3, window_bounds = array<i64: 256, 128>}, {pipeline_mode = #tpu.pipeline_mode<synchronous>, transform_indices = @transform_4, window_bounds = array<i64: 1, 128>}, {pipeline_mode = #tpu.pipeline_mode<synchronous>, transform_indices = @transform_5, window_bounds = array<i64: 128, 64>}, {pipeline_mode = #tpu.pipeline_mode<synchronous>, transform_indices = @transform_6, window_bounds = array<i64: 1, 64>}, {pipeline_mode = #tpu.pipeline_mode<synchronous>, transform_indices = @transform_7, window_bounds = array<i64: 64, 128>}, {pipeline_mode = #tpu.pipeline_mode<synchronous>, transform_indices = @transform_8, window_bounds = array<i64: 1, 128>}, {transform_indices = @transform_9, window_bounds = array<i64: 8, 128>}]} {
    %c0 = arith.constant 0 : index
    %c0_0 = arith.constant 0 : index
    %0 = vector.load %arg1[%c0, %c0_0] : memref<8x32xbf16, #tpu.memory_space<vmem>>, vector<8x32xbf16>
    %c0_1 = arith.constant 0 : index
    %c0_2 = arith.constant 0 : index
    %1 = vector.load %arg2[%c0_1, %c0_2] : memref<32x256xbf16, #tpu.memory_space<vmem>>, vector<32x256xbf16>
    %cst = arith.constant dense<0.000000e+00> : vector<8x256xf32>
    %2 = tpu.matmul %0, %1, %cst {dimension_numbers = #tpu.dot_dimension_numbers<[1], [0], [0], [1], [0, 0, 1, 1], [], []>} : vector<8x32xbf16>, vector<32x256xbf16>, vector<8x256xf32> -> vector<8x256xf32>
    %c0_3 = arith.constant 0 : index
    %c0_4 = arith.constant 0 : index
    %3 = vector.load %arg3[%c0_3, %c0_4] : memref<1x256xf32, #tpu.memory_space<vmem>>, vector<1x256xf32>
    %4 = vector.broadcast %3 : vector<1x256xf32> to vector<8x256xf32>
    %5 = arith.addf %2, %4 : vector<8x256xf32>
    %6 = math.tanh %5 : vector<8x256xf32>
    %7 = arith.truncf %6 : vector<8x256xf32> to vector<8x256xbf16>
    %c0_5 = arith.constant 0 : index
    %c0_6 = arith.constant 0 : index
    %8 = vector.load %arg4[%c0_5, %c0_6] : memref<256x128xbf16, #tpu.memory_space<vmem>>, vector<256x128xbf16>
    %cst_7 = arith.constant dense<0.000000e+00> : vector<8x128xf32>
    %9 = tpu.matmul %7, %8, %cst_7 {dimension_numbers = #tpu.dot_dimension_numbers<[1], [0], [0], [1], [0, 0, 1, 1], [], []>} : vector<8x256xbf16>, vector<256x128xbf16>, vector<8x128xf32> -> vector<8x128xf32>
    %c0_8 = arith.constant 0 : index
    %c0_9 = arith.constant 0 : index
    %10 = vector.load %arg5[%c0_8, %c0_9] : memref<1x128xf32, #tpu.memory_space<vmem>>, vector<1x128xf32>
    %11 = vector.broadcast %10 : vector<1x128xf32> to vector<8x128xf32>
    %12 = arith.addf %9, %11 : vector<8x128xf32>
    %13 = math.tanh %12 : vector<8x128xf32>
    %14 = arith.truncf %13 : vector<8x128xf32> to vector<8x128xbf16>
    %c0_10 = arith.constant 0 : index
    %c0_11 = arith.constant 0 : index
    %15 = vector.load %arg6[%c0_10, %c0_11] : memref<128x64xbf16, #tpu.memory_space<vmem>>, vector<128x64xbf16>
    %cst_12 = arith.constant dense<0.000000e+00> : vector<8x64xf32>
    %16 = tpu.matmul %14, %15, %cst_12 {dimension_numbers = #tpu.dot_dimension_numbers<[1], [0], [0], [1], [0, 0, 1, 1], [], []>} : vector<8x128xbf16>, vector<128x64xbf16>, vector<8x64xf32> -> vector<8x64xf32>
    %c0_13 = arith.constant 0 : index
    %c0_14 = arith.constant 0 : index
    %17 = vector.load %arg7[%c0_13, %c0_14] : memref<1x64xf32, #tpu.memory_space<vmem>>, vector<1x64xf32>
    %18 = vector.broadcast %17 : vector<1x64xf32> to vector<8x64xf32>
    %19 = arith.addf %16, %18 : vector<8x64xf32>
    %20 = math.tanh %19 : vector<8x64xf32>
    %21 = arith.truncf %20 : vector<8x64xf32> to vector<8x64xbf16>
    %c0_15 = arith.constant 0 : index
    %c0_16 = arith.constant 0 : index
    %22 = vector.load %arg8[%c0_15, %c0_16] : memref<64x128xbf16, #tpu.memory_space<vmem>>, vector<64x128xbf16>
    %cst_17 = arith.constant dense<0.000000e+00> : vector<8x128xf32>
    %23 = tpu.matmul %21, %22, %cst_17 {dimension_numbers = #tpu.dot_dimension_numbers<[1], [0], [0], [1], [0, 0, 1, 1], [], []>} : vector<8x64xbf16>, vector<64x128xbf16>, vector<8x128xf32> -> vector<8x128xf32>
    %c0_18 = arith.constant 0 : index
    %c0_19 = arith.constant 0 : index
    %24 = vector.load %arg9[%c0_18, %c0_19] : memref<1x128xf32, #tpu.memory_space<vmem>>, vector<1x128xf32>
    %25 = vector.broadcast %24 : vector<1x128xf32> to vector<8x128xf32>
    %26 = arith.addf %23, %25 : vector<8x128xf32>
    %c0_20 = arith.constant 0 : index
    %c0_21 = arith.constant 0 : index
    %27 = vector.load %arg10[%c0_20, %c0_21] : memref<8x128xf32, #tpu.memory_space<vmem>>, vector<8x128xf32>
    tpu.vector_store %arg10[%c0_20, %c0_21], %26 {strides = array<i32>} : memref<8x128xf32, #tpu.memory_space<vmem>>, vector<8x128xf32>,
    return
  }
  func.func @transform_0(%arg0: i32) -> (i32, i32) {
    %c0_i32 = arith.constant 0 : i32
    %c0_i32_0 = arith.constant 0 : i32
    return %arg0, %c0_i32 : i32, i32
  }
  func.func @transform_1(%arg0: i32) -> (i32, i32) {
    %c0_i32 = arith.constant 0 : i32
    %c0_i32_0 = arith.constant 0 : i32
    %c0_i32_1 = arith.constant 0 : i32
    return %c0_i32, %c0_i32_0 : i32, i32
  }
  func.func @transform_2(%arg0: i32) -> (i32, i32) {
    %c0_i32 = arith.constant 0 : i32
    %c0_i32_0 = arith.constant 0 : i32
    %c0_i32_1 = arith.constant 0 : i32
    return %c0_i32, %c0_i32_0 : i32, i32
  }
  func.func @transform_3(%arg0: i32) -> (i32, i32) {
    %c0_i32 = arith.constant 0 : i32
    %c0_i32_0 = arith.constant 0 : i32
    %c0_i32_1 = arith.constant 0 : i32
    return %c0_i32, %c0_i32_0 : i32, i32
  }
  func.func @transform_4(%arg0: i32) -> (i32, i32) {
    %c0_i32 = arith.constant 0 : i32
    %c0_i32_0 = arith.constant 0 : i32
    %c0_i32_1 = arith.constant 0 : i32
    return %c0_i32, %c0_i32_0 : i32, i32
  }
  func.func @transform_5(%arg0: i32) -> (i32, i32) {
    %c0_i32 = arith.constant 0 : i32
    %c0_i32_0 = arith.constant 0 : i32
    %c0_i32_1 = arith.constant 0 : i32
    return %c0_i32, %c0_i32_0 : i32, i32
  }
  func.func @transform_6(%arg0: i32) -> (i32, i32) {
    %c0_i32 = arith.constant 0 : i32
    %c0_i32_0 = arith.constant 0 : i32
    %c0_i32_1 = arith.constant 0 : i32
    return %c0_i32, %c0_i32_0 : i32, i32
  }
  func.func @transform_7(%arg0: i32) -> (i32, i32) {
    %c0_i32 = arith.constant 0 : i32
    %c0_i32_0 = arith.constant 0 : i32
    %c0_i32_1 = arith.constant 0 : i32
    return %c0_i32, %c0_i32_0 : i32, i32
  }
  func.func @transform_8(%arg0: i32) -> (i32, i32) {
    %c0_i32 = arith.constant 0 : i32
    %c0_i32_0 = arith.constant 0 : i32
    %c0_i32_1 = arith.constant 0 : i32
    return %c0_i32, %c0_i32_0 : i32, i32
  }
  func.func @transform_9(%arg0: i32) -> (i32, i32) {
    %c0_i32 = arith.constant 0 : i32
    %c0_i32_0 = arith.constant 0 : i32
    return %arg0, %c0_i32 : i32, i32
  }
}

</mosaic_0001>

<bundles_post_ra>
// kernel: tpu_custom_call.1
= control target key start
LH: loop header
LB: loop body
LE: loop exit
PB: predicated region body
PF: predicated region fallthrough
CT: control target
= control target key end

     0   :  { %14 = vsyncpa [#allocation3], 0  ;;  %s861_s0 = inlined_call_operand.vmem [shape: bf16[8,32], index: 0, kind: input, shape index: {}]   ;;  %s862_s1 = inlined_call_operand.vmem [shape: bf16[32,256], index: 1, kind: input, shape index: {}]   ;;  %s863_s2 = inlined_call_operand.vmem [shape: f32[1,256], index: 2, kind: input, shape index: {}]   ;;  %s864_s3 = inlined_call_operand.hbm [shape: bf16[256,128], index: 3, kind: input, shape index: {}]   ;;  %s865_s4 = inlined_call_operand.vmem [shape: f32[1,128], index: 4, kind: input, shape index: {}]   ;;  %s866_s5 = inlined_call_operand.vmem [shape: bf16[128,64], index: 5, kind: input, shape index: {}]   ;;  %s867_s6 = inlined_call_operand.vmem [shape: f32[1,64], index: 6, kind: input, shape index: {}]   ;;  %s868_s7 = inlined_call_operand.vmem [shape: bf16[64,128], index: 7, kind: input, shape index: {}]   ;;  %s869_s8 = inlined_call_operand.vmem [shape: f32[1,128], index: 8, kind: input, shape index: {}]   ;;  %s870_s9 = inlined_call_operand.hbm [shape: f32[8,128], index: 9, kind: output, shape index: {}]  }
   0x1   :  { %15 = vsyncpa [#allocation4], 0  ;;  %s721_s30 = smov [#allocation2]  }
   0x2   :  { %s27_s10 = sshll.u32 %s721_s30, 4  ;;  %s28_s10 = int_to_ptr.vmem [resolvable:$true] %s27_s10 }
   0x3   :  { %s685_s11 = scalar_lea.vmem %s28_s10, 2048  ;;  %p690_p1 = scmp.lt.s32.totalorder %s28_s10, %s28_s10 }
   0x4   :  { %p686_p0 = scmp.ne.s32.totalorder %s28_s10, %s685_s11  ;;  %p691_p2 = scmp.lt.s32.totalorder %s685_s11, %s685_s11 }
   0x6   :  { %p692_p3 = por %p691_p2, %p690_p1 }
   0x8   :  { %p693_p4 = pnand %p692_p3, %p686_p0 }
   0xa   :  { %696 = shalt.err (!%p693_p4)
}
   0xb   :  { %s722_s12 = smov 64   ;;  %s723_s13 = smov 4  }
   0xc   :  { %33 = dma.hbm_to_vmem [thread:$0]  %s864_s3, 2048, %s28_s10, [#allocation3], %s722_s12, %s722_s12, %s723_s13  }
   0xd   :  { %717 = dma.done.wait [#allocation3], 2048  }
   0xe   :  { %718 = vsyncadd [#allocation3], 4294965248  ;;  %v724_v0 = vmov 0   ;;  %v635_v1 = vld [vmem:[%s862_s1 + $0x14] ss:$8 sps:$4 sm:$0xff]   ;;  %vm85_vm0 = vcmask 261120   ;;  %v55_v25 = vlaneseq }
   0xf   :  { %121 = vmatprep.mubr.bf16.mxu0 %v724_v0  ;;  %v637_v2 = vld [vmem:[%s862_s1 + $0x10] ss:$8 sps:$4 sm:$0xff]   ;;  %101 = vmatprep.subr.bf16.mxu0 %v635_v1  ;;  %v638_v3 = vld [vmem:[%s862_s1 + $0x4] ss:$8 sps:$4 sm:$0xff]   ;;  %v640_v4 = vld [vmem:[%s862_s1] ss:$8 sps:$4 sm:$0xff]  }
  0x10   :  { %102 = vmatpush1.bf16.msra.mxu0 %v637_v2  ;;  %v641_v5 = vld [vmem:[#allocation2 + $0x78] sm:$0xff]   ;;  %v48_v7 = vld [vmem:[%s861_s0] sm:$0xf]  ;;  %v643_v8 = vld [vmem:[#allocation2 + $0x70] sm:$0xff]   ;;  %v725_v23 = vmov 0.0   ;;  %v56_v26 = vshrl.u32 %v55_v25, 7 }
  0x11   :  { %103 = vmatprep.subr.bf16.mxu0 %v638_v3  ;;  %v642_v6 = vld [vmem:[#allocation2 + $0x38] sm:$0xff]   ;;  %560 = vmatprep.subr.bf16.mxu1 %v641_v5  ;;  %v644_v9 = vld [vmem:[#allocation2 + $0x30] sm:$0xff]   ;;  %v645_v10 = vld [vmem:[#allocation2 + $0x68] sm:$0xff]   ;;  %vm726_vm1 = vmmov 0   ;;  %vm463_vm2 = vcmask 523264  }
  0x12   :  { %561 = vmatpush3.bf16.msra.mxu1 %v642_v6  ;;  %v646_v11 = vld [vmem:[#allocation2 + $0x28] sm:$0xff]   ;;  %v647_v12 = vld [vmem:[#allocation2 + $0x60] sm:$0xff]   ;;  %v649_v14 = vld [vmem:[#allocation2 + $0x58] sm:$0xff]   ;;  %v57_v27 = vsub.s32 0, %v56_v26  ;;  %v61_v29 = vsub.s32 1, %v56_v26 }
  0x13   :  { %562 = vmatprep.subr.bf16.mxu1 %v643_v8  ;;  %v648_v13 = vld [vmem:[#allocation2 + $0x20] sm:$0xff]   ;;  %v650_v15 = vld [vmem:[#allocation2 + $0x18] sm:$0xff]   ;;  %v651_v16 = vld [vmem:[#allocation2 + $0x50] sm:$0xff]  }
  0x14   :  { %104 = vmatpush1.bf16.msra.mxu0 %v640_v4  ;;  %v652_v17 = vld [vmem:[#allocation2 + $0x10] sm:$0xff]   ;;  %v653_v18 = vld [vmem:[#allocation2 + $0x48] sm:$0xff]   ;;  %v655_v20 = vld [vmem:[#allocation2 + $0x40] sm:$0xff]  }
  0x15   :  { %v654_v19 = vld [vmem:[#allocation2 + $0x8] sm:$0xff]   ;;  %v656_v21 = vld [vmem:[#allocation2] sm:$0xff]   ;;  %v657_v22 = vld [vmem:[%s866_s5 + $0x38] sm:$0xff]   ;;  %596 = vmatprep.subr.bf16.mxu0 %v725_v23 }
  0x16   :  { %563 = vmatpush3.bf16.msra.mxu1 %v644_v9  ;;  %v658_v24 = vld [vmem:[%s866_s5 + $0x30] sm:$0xff]   ;;  %v53_v28 = vld [vmem:[%s863_s2] sm:$0x3]  ;;  %v659_v42 = vld [vmem:[%s866_s5 + $0x28] sm:$0xff]  }
  0x17   :  { %527 = vmatmul.mubr.msk.bf16.vlgmr.msra.gmra.mxu0 %vm85_vm0, %v48_v7  ;;  %564 = vmatprep.subr.bf16.mxu1 %v645_v10  ;;  %v58_v30 = vrot.slane %v53_v28, %v57_v27  ;;  %v62_v31 = vrot.slane %v53_v28, %v61_v29  ;;  %v660_v43 = vld [vmem:[%s866_s5 + $0x20] sm:$0xff]   ;;  %v661_v44 = vld [vmem:[%s866_s5 + $0x18] sm:$0xff]   ;;  %v662_v45 = vld [vmem:[%s866_s5 + $0x10] sm:$0xff]  }
  0x18   :  { %597 = vmatpush3.bf16.msra.mxu0 %v657_v22  ;;  %v663_v46 = vld [vmem:[%s866_s5 + $0x8] sm:$0xff]   ;;  %v664_v47 = vld [vmem:[%s866_s5] sm:$0xff]   ;;  %612 = vmatprep.mubr.msk.bf16.mxu0 %vm726_vm1, %v725_v23  ;;  %v665_v57 = vld [vmem:[%s868_s7 + $0x18] sm:$0xff]  }
  0x19   :  { %598 = vmatprep.subr.bf16.mxu0 %v725_v23  ;;  %v528_v49 = vld [vmem:[%s865_s4] ss:$0 sm:$0xff]  ;;  %v666_v58 = vld [vmem:[%s868_s7 + $0x10] sm:$0xff]   ;;  %v667_v59 = vld [vmem:[%s868_s7 + $0x8] sm:$0xff]  }
  0x1a   :  { %565 = vmatpush3.bf16.msra.mxu1 %v646_v11  ;;  %v668_v60 = vld [vmem:[%s868_s7] sm:$0xff]   ;;  %s727_s7 = smov [#allocation5]  }
  0x1b   :  { %566 = vmatprep.subr.bf16.mxu1 %v647_v12  ;;  %v545_v61 = vld [vmem:[%s867_s6] ss:$0 sm:$0xff]  ;;  %s514_s28 = sshll.u32 %s727_s7, 4  ;;  %s515_s28 = int_to_ptr.vmem [resolvable:$true] %s514_s28 }
  0x1c   :  { %599 = vmatpush3.bf16.msra.mxu0 %v658_v24  ;;  %v554_v5 = vld [vmem:[%s869_s8] ss:$0 sm:$0xff]  ;;  %s697_s6 = scalar_lea.vmem %s515_s28, 128  ;;  %p702_p6 = scmp.lt.s32.totalorder %s515_s28, %s515_s28 }
  0x1d   :  { %600 = vmatprep.subr.bf16.mxu0 %v725_v23  ;;  %p698_p5 = scmp.ne.s32.totalorder %s515_s28, %s697_s6  ;;  %p703_p7 = scmp.lt.s32.totalorder %s697_s6, %s697_s6 }
  0x1e   :  { %567 = vmatpush3.bf16.msra.mxu1 %v648_v13 }
  0x1f   :  { %568 = vmatprep.subr.bf16.mxu1 %v649_v14  ;;  %p704_p8 = por %p703_p7, %p702_p6 }
  0x20   :  { %601 = vmatpush3.bf16.msra.mxu0 %v659_v42 }
  0x21   :  { %602 = vmatprep.subr.bf16.mxu0 %v725_v23  ;;  %p705_p9 = pnand %p704_p8, %p698_p5 }
  0x22   :  { %569 = vmatpush3.bf16.msra.mxu1 %v650_v15 }
  0x23   :  { %570 = vmatprep.subr.bf16.mxu1 %v651_v16 }
  0x24   :  { %603 = vmatpush3.bf16.msra.mxu0 %v660_v43 }
  0x25   :  { %604 = vmatprep.subr.bf16.mxu0 %v725_v23 }
  0x26   :  { %571 = vmatpush3.bf16.msra.mxu1 %v652_v17 }
  0x27   :  { %572 = vmatprep.subr.bf16.mxu1 %v653_v18 }
  0x28   :  { %605 = vmatpush3.bf16.msra.mxu0 %v661_v44 }
  0x29   :  { %606 = vmatprep.subr.bf16.mxu0 %v725_v23 }
  0x2a   :  { %573 = vmatpush3.bf16.msra.mxu1 %v654_v19 }
  0x2b   :  { %574 = vmatprep.subr.bf16.mxu1 %v655_v20 }
  0x2c   :  { %607 = vmatpush3.bf16.msra.mxu0 %v662_v45 }
  0x2d   :  { %608 = vmatprep.subr.bf16.mxu0 %v725_v23 }
  0x2e   :  { %575 = vmatpush3.bf16.msra.mxu1 %v656_v21 }
  0x2f   :  { %616 = vmatprep.subr.bf16.mxu1 %v725_v23 }
  0x30   :  { %609 = vmatpush3.bf16.msra.mxu0 %v663_v46 }
  0x31   :  { %610 = vmatprep.subr.bf16.mxu0 %v725_v23 }
  0x34   :  { %611 = vmatpush3.bf16.msra.mxu0 %v664_v47 }
  0xd7   :  { %v123_v32 = vpop.f32.mrf.mxu0 }
  0xd8   :  { %v124_v33 = vadd.f32 %v123_v32, %v58_v30 }
  0xd9   :  { %v125_v34 = vpop.f32.mrf.mxu0 }
  0xda   :  { %v126_v35 = vadd.f32 %v125_v34, %v62_v31  ;;  %669 = vtanh.f32 %v124_v33 }
  0xdb   :  { %v127_v36 = vpop.f32.mrf.mxu0 }
  0xdc   :  { %671 = vtanh.f32 %v126_v35 }
  0xdd   :  { %v128_v37 = vpop.f32.mrf.mxu0 }
  0xe7   :  { %v670_v38 = vpop.eup %669 }
  0xe8   :  { %v132_v41 = vpack.c.bf16 %v670_v38, %v670_v38 }
  0xe9   :  { %v672_v39 = vpop.eup %671 }
  0xea   :  { %v133_v40 = vpack.c.bf16 %v672_v39, %v672_v39 }
  0xec   :  { %301 = vmatprep.mubr.bf16.mxu1 %v133_v40 }
  0xed   :  { %302 = vmatmul.mubr.bf16.vlgmr.msra.gmra.mxu1 %v132_v41 }
  0xee   :  { %624 = vmatprep.mubr.msk.bf16.mxu1 %vm726_vm1, %v725_v23  ;;  %617 = vmatpush3.bf16.msra.mxu1 %v665_v57 }
  0xef   :  { %618 = vmatprep.subr.bf16.mxu1 %v725_v23 }
  0xf2   :  { %619 = vmatpush3.bf16.msra.mxu1 %v666_v58 }
  0xf3   :  { %620 = vmatprep.subr.bf16.mxu1 %v725_v23 }
  0xf6   :  { %621 = vmatpush3.bf16.msra.mxu1 %v667_v59 }
  0xf7   :  { %622 = vmatprep.subr.bf16.mxu1 %v725_v23 }
  0xfa   :  { %623 = vmatpush3.bf16.msra.mxu1 %v668_v60 }
 0x1ad   :  { %v576_v48 = vpop.f32.mrf.mxu1 }
 0x1af   :  { %v577_v50 = vpop.f32.mrf.mxu1 }
 0x1b0   :  { %v578_v51 = vadd.f32 %v577_v50, %v576_v48 }
 0x1b1   :  { %v579_v52 = vpop.f32.mrf.mxu1 }
 0x1b2   :  { %v304_v53 = vadd.f32 %v578_v51, %v528_v49 }
 0x1b3   :  { %v580_v54 = vpop.f32.mrf.mxu1 }
 0x1b4   :  { %673 = vtanh.f32 %v304_v53 }
 0x1c1   :  { %v674_v55 = vpop.eup %673 }
 0x1c2   :  { %v310_v56 = vpack.c.bf16 %v674_v55, %v674_v55 }
 0x1c4   :  { %613 = vmatmul.mubr.bf16.vlgmr.msra.gmra.mxu0 %v310_v56 }
 0x284   :  { %v416_v62 = vpop.f32.mrf.mxu0 }
 0x285   :  { %v417_v63 = vadd.f32 %v545_v61, %v416_v62 }
 0x286   :  { %v614_v0 = vpop.f32.mrf.mxu0 }
 0x287   :  { %675 = vtanh.f32 %v417_v63 }
 0x288   :  { %v419_v1 = vpop.f32.mrf.mxu0 }
 0x28a   :  { %v615_v2 = vpop.f32.mrf.mxu0 }
 0x294   :  { %v676_v3 = vpop.eup %675 }
 0x295   :  { %v423_v4 = vpack.c.bf16 %v676_v3, %v676_v3 }
 0x297   :  { %625 = vmatmul.mubr.msk.bf16.vlgmr.msra.gmra.mxu1 %vm463_vm2, %v423_v4 }
 0x357   :  { %v501_v6 = vpop.f32.mrf.mxu1 }
 0x358   :  { %v502_v7 = vadd.f32 %v554_v5, %v501_v6 }
 0x359   :  { %v626_v8 = vpop.f32.mrf.mxu1 }
 0x35a   :  { %507 = vst [vmem:[#allocation5] sm:$0xff] %v502_v7 }
 0x35b   :  { %v504_v9 = vpop.f32.mrf.mxu1 }
 0x35c   :  { %708 = shalt.err (!%p705_p9)
}
 0x35d   :  { %517 = dma.vmem_to_hbm [thread:$0]  %s515_s28, 128, %s870_s9, [#allocation4]   ;;  %v627_v10 = vpop.f32.mrf.mxu1 }
 0x35e   :  { %719 = dma.done.wait [#allocation4], 128  }
 0x35f   :  { %720 = vsyncadd [#allocation4], 4294967168 }
 0x360   :  { %521 = vsyncpa [#allocation3], 1 }
 0x361   :  { %522 = vsyncpa [#allocation4], 1 }

</bundles_post_ra>
